<compile_context>
chip_gen: v7x
topology: tpu7x:2x2x1
jax: 0.10.0
libtpu: 0.0.40
codegen_flags: <defaults>
</compile_context>

<pallas_src>
import jax
import jax.numpy as jnp
from jax.experimental import pallas as pl
from jax.experimental.pallas import tpu as pltpu

STATE_DIM = 3      # Pendulum observation_space.shape[0]
STATE_PAD = 8      # pad K of first layer to a sublane multiple
ACTION_DIM = 11    # action_space.shape[0] * 11 = 1 * 11
OUT_PAD = 128      # lane-dense padded output width
H1, H2, H3 = 128, 128, 64


def _round_up(x, m):
    return ((x + m - 1) // m) * m


def qnetwork_kernel(x_ref,
                    w1_ref, b1_ref,
                    w2_ref, b2_ref,
                    w3_ref, b3_ref,
                    w4_ref, b4_ref,
                    o_ref):
    # Entire forward pass fused in VMEM; matmuls hit the MXU with f32 accum.
    h = jnp.dot(x_ref[...], w1_ref[...], preferred_element_type=jnp.float32) + b1_ref[...]
    h = jnp.maximum(h, 0.0)
    h = jnp.dot(h, w2_ref[...], preferred_element_type=jnp.float32) + b2_ref[...]
    h = jnp.maximum(h, 0.0)
    h = jnp.dot(h, w3_ref[...], preferred_element_type=jnp.float32) + b3_ref[...]
    h = jnp.maximum(h, 0.0)
    out = jnp.dot(h, w4_ref[...], preferred_element_type=jnp.float32) + b4_ref[...]
    o_ref[...] = out.astype(o_ref.dtype)


def qnetwork_forward(x, params, *, batch_tile=256):
    """x: [batch, 3] f32.  params: ((w1,b1),(w2,b2),(w3,b3),(w4,b4)),
    weights stored [in, out] (transposed vs. PyTorch)."""
    (w1, b1), (w2, b2), (w3, b3), (w4, b4) = params
    batch = x.shape[0]

    # --- pad the degenerate first-layer contraction (3 -> 8) -----------------
    x_p = jnp.pad(x, ((0, 0), (0, STATE_PAD - STATE_DIM)))
    w1_p = jnp.pad(w1, ((0, STATE_PAD - STATE_DIM), (0, 0)))

    # --- pad the output features to a lane-dense 128 -------------------------
    w4_p = jnp.pad(w4, ((0, 0), (0, OUT_PAD - ACTION_DIM)))
    b4_p = jnp.pad(b4, ((0, 0), (0, OUT_PAD - ACTION_DIM)))

    # --- batch tiling ---------------------------------------------------------
    tb = min(batch_tile, _round_up(batch, 8))
    b_pad = _round_up(batch, tb)
    if b_pad != batch:
        x_p = jnp.pad(x_p, ((0, b_pad - batch), (0, 0)))
    grid = (b_pad // tb,)

    act_spec = pl.BlockSpec((tb, STATE_PAD), lambda i: (i, 0))
    out_spec = pl.BlockSpec((tb, OUT_PAD), lambda i: (i, 0))

    def resident(shape):
        # Same block index for every grid step -> weights DMA'd once,
        # stay VMEM-resident across the whole batch sweep.
        return pl.BlockSpec(shape, lambda i: (0, 0))

    flops = 2 * b_pad * (STATE_PAD * H1 + H1 * H2 + H2 * H3 + H3 * OUT_PAD)
    bytes_accessed = 4 * (
        x_p.size
        + w1_p.size + b1.size + w2.size + b2.size + w3.size + b3.size
        + w4_p.size + b4_p.size
        + b_pad * OUT_PAD
    )

    out = pl.pallas_call(
        qnetwork_kernel,
        out_shape=jax.ShapeDtypeStruct((b_pad, OUT_PAD), jnp.float32),
        grid=grid,
        in_specs=[
            act_spec,
            resident((STATE_PAD, H1)), resident((1, H1)),
            resident((H1, H2)),        resident((1, H2)),
            resident((H2, H3)),        resident((1, H3)),
            resident((H3, OUT_PAD)),   resident((1, OUT_PAD)),
        ],
        out_specs=out_spec,
        compiler_params=pltpu.CompilerParams(
            dimension_semantics=("parallel",)),
        cost_estimate=pl.CostEstimate(
            flops=flops, transcendentals=0, bytes_accessed=bytes_accessed),
    )(x_p, w1_p, b1, w2, b2, w3, b3, w4_p, b4_p)

    return out[:batch, :ACTION_DIM]


def init_linear(key, fan_in, fan_out):
    # Deterministic init mimicking PyTorch's default U(-1/sqrt(fan_in), +1/sqrt(fan_in)).
    kw, kb = jax.random.split(key)
    bound = 1.0 / jnp.sqrt(jnp.float32(fan_in))
    # Stored as [in, out] (transposed relative to torch's [out, in]).
    w = jax.random.uniform(kw, (fan_in, fan_out), jnp.float32, -bound, bound)
    b = jax.random.uniform(kb, (1, fan_out), jnp.float32, -bound, bound)
    return w, b


def reference_forward(x, params):
    (w1, b1), (w2, b2), (w3, b3), (w4, b4) = params
    h = jnp.maximum(x @ w1 + b1, 0.0)
    h = jnp.maximum(h @ w2 + b2, 0.0)
    h = jnp.maximum(h @ w3 + b3, 0.0)
    return h @ w4 + b4


if __name__ == "__main__":
    key = jax.random.PRNGKey(0)
    kx, k1, k2, k3, k4 = jax.random.split(key, 5)

    batch = 8
    x = jax.random.normal(kx, (batch, STATE_DIM), jnp.float32)

    params = (
        init_linear(k1, STATE_DIM, H1),
        init_linear(k2, H1, H2),
        init_linear(k3, H2, H3),
        init_linear(k4, H3, ACTION_DIM),
    )

    out = qnetwork_forward(x, params)
    out = jax.block_until_ready(out)

    ref = reference_forward(x, params)
    assert out.shape == (batch, ACTION_DIM)
    assert jnp.allclose(out, ref, atol=1e-4, rtol=1e-4)

    # Also exercise a non-multiple-of-tile batch to check padding paths.
    x2 = jax.random.normal(kx, (5, STATE_DIM), jnp.float32)
    out2 = jax.block_until_ready(qnetwork_forward(x2, params))
    assert out2.shape == (5, ACTION_DIM)
    assert jnp.allclose(out2, reference_forward(x2, params), atol=1e-4, rtol=1e-4)

    print("KERNEL_OK")
</pallas_src>

<mosaic_0001>
module attributes {stable_mosaic.version = 11 : i64} {
  func.func @qnetwork_kernel(%arg0: i32, %arg1: memref<8x8xf32, #tpu.memory_space<vmem>>, %arg2: memref<8x128xf32, #tpu.memory_space<vmem>>, %arg3: memref<1x128xf32, #tpu.memory_space<vmem>>, %arg4: memref<128x128xf32, #tpu.memory_space<vmem>>, %arg5: memref<1x128xf32, #tpu.memory_space<vmem>>, %arg6: memref<128x64xf32, #tpu.memory_space<vmem>>, %arg7: memref<1x64xf32, #tpu.memory_space<vmem>>, %arg8: memref<64x128xf32, #tpu.memory_space<vmem>>, %arg9: memref<1x128xf32, #tpu.memory_space<vmem>>, %arg10: memref<8x128xf32, #tpu.memory_space<vmem>>) attributes {dimension_semantics = [#tpu.dimension_semantics<parallel>], iteration_bounds = array<i64: 1>, scalar_prefetch = 0 : i64, scratch_operands = 0 : i64, tpu.core_type = #tpu.core_type<tc>, window_params = [{transform_indices = @transform_0, window_bounds = array<i64: 8, 8>}, {pipeline_mode = #tpu.pipeline_mode<synchronous>, transform_indices = @transform_1, window_bounds = array<i64: 8, 128>}, {pipeline_mode = #tpu.pipeline_mode<synchronous>, transform_indices = @transform_2, window_bounds = array<i64: 1, 128>}, {pipeline_mode = #tpu.pipeline_mode<synchronous>, transform_indices = @transform_3, window_bounds = array<i64: 128, 128>}, {pipeline_mode = #tpu.pipeline_mode<synchronous>, transform_indices = @transform_4, window_bounds = array<i64: 1, 128>}, {pipeline_mode = #tpu.pipeline_mode<synchronous>, transform_indices = @transform_5, window_bounds = array<i64: 128, 64>}, {pipeline_mode = #tpu.pipeline_mode<synchronous>, transform_indices = @transform_6, window_bounds = array<i64: 1, 64>}, {pipeline_mode = #tpu.pipeline_mode<synchronous>, transform_indices = @transform_7, window_bounds = array<i64: 64, 128>}, {pipeline_mode = #tpu.pipeline_mode<synchronous>, transform_indices = @transform_8, window_bounds = array<i64: 1, 128>}, {transform_indices = @transform_9, window_bounds = array<i64: 8, 128>}]} {
    %c0 = arith.constant 0 : index
    %c0_0 = arith.constant 0 : index
    %0 = vector.load %arg1[%c0, %c0_0] : memref<8x8xf32, #tpu.memory_space<vmem>>, vector<8x8xf32>
    %c0_1 = arith.constant 0 : index
    %c0_2 = arith.constant 0 : index
    %1 = vector.load %arg2[%c0_1, %c0_2] : memref<8x128xf32, #tpu.memory_space<vmem>>, vector<8x128xf32>
    %cst = arith.constant dense<0.000000e+00> : vector<8x128xf32>
    %2 = tpu.matmul %0, %1, %cst {dimension_numbers = #tpu.dot_dimension_numbers<[1], [0], [0], [1], [0, 0, 1, 1], [], []>} : vector<8x8xf32>, vector<8x128xf32>, vector<8x128xf32> -> vector<8x128xf32>
    %c0_3 = arith.constant 0 : index
    %c0_4 = arith.constant 0 : index
    %3 = vector.load %arg3[%c0_3, %c0_4] : memref<1x128xf32, #tpu.memory_space<vmem>>, vector<1x128xf32>
    %4 = vector.broadcast %3 : vector<1x128xf32> to vector<8x128xf32>
    %5 = arith.addf %2, %4 : vector<8x128xf32>
    %cst_5 = arith.constant 0.000000e+00 : f32
    %6 = vector.broadcast %cst_5 : f32 to vector<8x128xf32>
    %7 = arith.maximumf %5, %6 : vector<8x128xf32>
    %c0_6 = arith.constant 0 : index
    %c0_7 = arith.constant 0 : index
    %8 = vector.load %arg4[%c0_6, %c0_7] : memref<128x128xf32, #tpu.memory_space<vmem>>, vector<128x128xf32>
    %cst_8 = arith.constant dense<0.000000e+00> : vector<8x128xf32>
    %9 = tpu.matmul %7, %8, %cst_8 {dimension_numbers = #tpu.dot_dimension_numbers<[1], [0], [0], [1], [0, 0, 1, 1], [], []>} : vector<8x128xf32>, vector<128x128xf32>, vector<8x128xf32> -> vector<8x128xf32>
    %c0_9 = arith.constant 0 : index
    %c0_10 = arith.constant 0 : index
    %10 = vector.load %arg5[%c0_9, %c0_10] : memref<1x128xf32, #tpu.memory_space<vmem>>, vector<1x128xf32>
    %11 = vector.broadcast %10 : vector<1x128xf32> to vector<8x128xf32>
    %12 = arith.addf %9, %11 : vector<8x128xf32>
    %cst_11 = arith.constant 0.000000e+00 : f32
    %13 = vector.broadcast %cst_11 : f32 to vector<8x128xf32>
    %14 = arith.maximumf %12, %13 : vector<8x128xf32>
    %c0_12 = arith.constant 0 : index
    %c0_13 = arith.constant 0 : index
    %15 = vector.load %arg6[%c0_12, %c0_13] : memref<128x64xf32, #tpu.memory_space<vmem>>, vector<128x64xf32>
    %cst_14 = arith.constant dense<0.000000e+00> : vector<8x64xf32>
    %16 = tpu.matmul %14, %15, %cst_14 {dimension_numbers = #tpu.dot_dimension_numbers<[1], [0], [0], [1], [0, 0, 1, 1], [], []>} : vector<8x128xf32>, vector<128x64xf32>, vector<8x64xf32> -> vector<8x64xf32>
    %c0_15 = arith.constant 0 : index
    %c0_16 = arith.constant 0 : index
    %17 = vector.load %arg7[%c0_15, %c0_16] : memref<1x64xf32, #tpu.memory_space<vmem>>, vector<1x64xf32>
    %18 = vector.broadcast %17 : vector<1x64xf32> to vector<8x64xf32>
    %19 = arith.addf %16, %18 : vector<8x64xf32>
    %cst_17 = arith.constant 0.000000e+00 : f32
    %20 = vector.broadcast %cst_17 : f32 to vector<8x64xf32>
    %21 = arith.maximumf %19, %20 : vector<8x64xf32>
    %c0_18 = arith.constant 0 : index
    %c0_19 = arith.constant 0 : index
    %22 = vector.load %arg8[%c0_18, %c0_19] : memref<64x128xf32, #tpu.memory_space<vmem>>, vector<64x128xf32>
    %cst_20 = arith.constant dense<0.000000e+00> : vector<8x128xf32>
    %23 = tpu.matmul %21, %22, %cst_20 {dimension_numbers = #tpu.dot_dimension_numbers<[1], [0], [0], [1], [0, 0, 1, 1], [], []>} : vector<8x64xf32>, vector<64x128xf32>, vector<8x128xf32> -> vector<8x128xf32>
    %c0_21 = arith.constant 0 : index
    %c0_22 = arith.constant 0 : index
    %24 = vector.load %arg9[%c0_21, %c0_22] : memref<1x128xf32, #tpu.memory_space<vmem>>, vector<1x128xf32>
    %25 = vector.broadcast %24 : vector<1x128xf32> to vector<8x128xf32>
    %26 = arith.addf %23, %25 : vector<8x128xf32>
    %c0_23 = arith.constant 0 : index
    %c0_24 = arith.constant 0 : index
    %27 = vector.load %arg10[%c0_23, %c0_24] : memref<8x128xf32, #tpu.memory_space<vmem>>, vector<8x128xf32>
    tpu.vector_store %arg10[%c0_23, %c0_24], %26 {strides = array<i32>} : memref<8x128xf32, #tpu.memory_space<vmem>>, vector<8x128xf32>,
    return
  }
  func.func @transform_0(%arg0: i32) -> (i32, i32) {
    %c0_i32 = arith.constant 0 : i32
    %c0_i32_0 = arith.constant 0 : i32
    return %arg0, %c0_i32 : i32, i32
  }
  func.func @transform_1(%arg0: i32) -> (i32, i32) {
    %c0_i32 = arith.constant 0 : i32
    %c0_i32_0 = arith.constant 0 : i32
    %c0_i32_1 = arith.constant 0 : i32
    return %c0_i32, %c0_i32_0 : i32, i32
  }
  func.func @transform_2(%arg0: i32) -> (i32, i32) {
    %c0_i32 = arith.constant 0 : i32
    %c0_i32_0 = arith.constant 0 : i32
    %c0_i32_1 = arith.constant 0 : i32
    return %c0_i32, %c0_i32_0 : i32, i32
  }
  func.func @transform_3(%arg0: i32) -> (i32, i32) {
    %c0_i32 = arith.constant 0 : i32
    %c0_i32_0 = arith.constant 0 : i32
    %c0_i32_1 = arith.constant 0 : i32
    return %c0_i32, %c0_i32_0 : i32, i32
  }
  func.func @transform_4(%arg0: i32) -> (i32, i32) {
    %c0_i32 = arith.constant 0 : i32
    %c0_i32_0 = arith.constant 0 : i32
    %c0_i32_1 = arith.constant 0 : i32
    return %c0_i32, %c0_i32_0 : i32, i32
  }
  func.func @transform_5(%arg0: i32) -> (i32, i32) {
    %c0_i32 = arith.constant 0 : i32
    %c0_i32_0 = arith.constant 0 : i32
    %c0_i32_1 = arith.constant 0 : i32
    return %c0_i32, %c0_i32_0 : i32, i32
  }
  func.func @transform_6(%arg0: i32) -> (i32, i32) {
    %c0_i32 = arith.constant 0 : i32
    %c0_i32_0 = arith.constant 0 : i32
    %c0_i32_1 = arith.constant 0 : i32
    return %c0_i32, %c0_i32_0 : i32, i32
  }
  func.func @transform_7(%arg0: i32) -> (i32, i32) {
    %c0_i32 = arith.constant 0 : i32
    %c0_i32_0 = arith.constant 0 : i32
    %c0_i32_1 = arith.constant 0 : i32
    return %c0_i32, %c0_i32_0 : i32, i32
  }
  func.func @transform_8(%arg0: i32) -> (i32, i32) {
    %c0_i32 = arith.constant 0 : i32
    %c0_i32_0 = arith.constant 0 : i32
    %c0_i32_1 = arith.constant 0 : i32
    return %c0_i32, %c0_i32_0 : i32, i32
  }
  func.func @transform_9(%arg0: i32) -> (i32, i32) {
    %c0_i32 = arith.constant 0 : i32
    %c0_i32_0 = arith.constant 0 : i32
    return %arg0, %c0_i32 : i32, i32
  }
}

</mosaic_0001>

<bundles_post_ra>
// kernel: tpu_custom_call.1
= control target key start
LH: loop header
LB: loop body
LE: loop exit
PB: predicated region body
PF: predicated region fallthrough
CT: control target
= control target key end

     0   :  { %14 = vsyncpa [#allocation3], 0  ;;  %s923_s0 = inlined_call_operand.vmem [shape: f32[8,8], index: 0, kind: input, shape index: {}]   ;;  %s924_s1 = inlined_call_operand.hbm [shape: f32[8,128], index: 1, kind: input, shape index: {}]   ;;  %s925_s2 = inlined_call_operand.vmem [shape: f32[1,128], index: 2, kind: input, shape index: {}]   ;;  %s926_s3 = inlined_call_operand.vmem [shape: f32[128,128], index: 3, kind: input, shape index: {}]   ;;  %s927_s4 = inlined_call_operand.vmem [shape: f32[1,128], index: 4, kind: input, shape index: {}]   ;;  %s928_s5 = inlined_call_operand.vmem [shape: f32[128,64], index: 5, kind: input, shape index: {}]   ;;  %s929_s6 = inlined_call_operand.vmem [shape: f32[1,64], index: 6, kind: input, shape index: {}]   ;;  %s930_s7 = inlined_call_operand.vmem [shape: f32[64,128], index: 7, kind: input, shape index: {}]   ;;  %s931_s8 = inlined_call_operand.vmem [shape: f32[1,128], index: 8, kind: input, shape index: {}]   ;;  %s932_s9 = inlined_call_operand.hbm [shape: f32[8,128], index: 9, kind: output, shape index: {}]  }
   0x1   :  { %15 = vsyncpa [#allocation4], 0  ;;  %s680_s30 = smov [#allocation2]   ;;  %s632_s13 = scalar_lea.hbm %s924_s1, 128 }
   0x2   :  { %s24_s10 = sshll.u32 %s680_s30, 4  ;;  %p633_p0 = scmp.ne.s32.totalorder %s924_s1, %s632_s13  ;;  %s25_s10 = int_to_ptr.vmem [resolvable:$true] %s24_s10 }
   0x3   :  { %p636_p1 = scmp.lt.u32.totalorder %s632_s13, %s924_s1 }
   0x5   :  { %p638_p2 = pnand %p636_p1, %p633_p0 }
   0x7   :  { %641 = shalt.err (!%p638_p2)
}
   0x8   :  { %s642_s18 = scalar_lea.vmem %s25_s10, 128  ;;  %p647_p4 = scmp.lt.s32.totalorder %s25_s10, %s25_s10 }
   0x9   :  { %p643_p3 = scmp.ne.s32.totalorder %s25_s10, %s642_s18  ;;  %p648_p5 = scmp.lt.s32.totalorder %s642_s18, %s642_s18 }
   0xb   :  { %p649_p6 = por %p648_p5, %p647_p4 }
   0xd   :  { %p650_p7 = pnand %p649_p6, %p643_p3 }
   0xf   :  { %653 = shalt.err (!%p650_p7)
}
  0x10   :  { %27 = dma.hbm_to_vmem [thread:$0]  %s924_s1, 128, %s25_s10, [#allocation3]  }
  0x11   :  { %676 = dma.done.wait [#allocation3], 128  }
  0x12   :  { %677 = vsyncadd [#allocation3], 4294967168  ;;  %v681_v0 = vmov 0.0   ;;  %vm682_vm0 = vmmov 0   ;;  %v683_v1 = vmov 0.0|0.0   ;;  %vm54_vm1 = vcmask 64512  }
  0x13   :  { %473 = vmatprep.subr.mxu0 %v681_v0  ;;  %475 = vmatprep.mubr.msk.f32.mxu0 %vm682_vm0, %v681_v0  ;;  %v46_v2 = vld [vmem:[#allocation2] sm:$0xff]  ;;  %v130_v5 = vld [vmem:[%s926_s3 + $0x8] sm:$0xff]  ;;  %v131_v6 = vld [vmem:[%s926_s3 + $0x10] sm:$0xff]  ;;  %vm332_vm2 = vcmask 523264   ;;  %s684_s14 = smov [#allocation5]  }
  0x14   :  { %567 = vmatprep.subr.bf16.mxu1 %v683_v1  ;;  %510 = vmatprep.mubr.msk.f32.mxu1 %vm682_vm0, %v681_v0  ;;  %v45_v3 = vld [vmem:[%s923_s0] sm:$0xff]  ;;  %v132_v7 = vld [vmem:[%s926_s3 + $0x18] sm:$0xff]  ;;  %v134_v11 = vld [vmem:[%s926_s3 + $0x28] sm:$0xff]  ;;  %s413_s15 = sshll.u32 %s684_s14, 4  ;;  %s414_s15 = int_to_ptr.vmem [resolvable:$true] %s413_s15 }
  0x15   :  { %v129_v4 = vld [vmem:[%s926_s3] sm:$0xff]  ;;  %474 = vmatpush3.msra.mxu0 %v46_v2  ;;  %v571_v9 = vpack.c.bf16 %v132_v7, %v131_v6  ;;  %v135_v13 = vld [vmem:[%s926_s3 + $0x30] sm:$0xff]  ;;  %v136_v14 = vld [vmem:[%s926_s3 + $0x38] sm:$0xff]  ;;  %p659_p9 = scmp.lt.s32.totalorder %s414_s15, %s414_s15 }
  0x16   :  { %476 = vmatmul.mubr.msk.f32.vlgmr.msra.gmra.mrb[0].mxu0 %vm54_vm1, %v45_v3  ;;  %v568_v8 = vpack.c.bf16 %v130_v5, %v129_v4  ;;  %591 = vmatprep.subr.bf16.mxu0 %v683_v1  ;;  %v133_v10 = vld [vmem:[%s926_s3 + $0x20] sm:$0xff]  ;;  %v577_v15 = vpack.c.bf16 %v136_v14, %v135_v13  ;;  %v138_v17 = vld [vmem:[%s926_s3 + $0x48] sm:$0xff]  ;;  %v139_v19 = vld [vmem:[%s926_s3 + $0x50] sm:$0xff] }
  0x17   :  { %545 = vmatprep.mubr.msk.f32.mxu0 %vm682_vm0, %v681_v0  ;;  %v574_v12 = vpack.c.bf16 %v134_v11, %v133_v10  ;;  %v137_v16 = vld [vmem:[%s926_s3 + $0x40] sm:$0xff]  ;;  %v140_v20 = vld [vmem:[%s926_s3 + $0x58] sm:$0xff]  ;;  %v142_v23 = vld [vmem:[%s926_s3 + $0x68] sm:$0xff] }
  0x18   :  { %569 = vmatpush3.bf16.msra.mxu1 %v568_v8  ;;  %v580_v18 = vpack.c.bf16 %v138_v17, %v137_v16  ;;  %v583_v21 = vpack.c.bf16 %v140_v20, %v139_v19  ;;  %v141_v22 = vld [vmem:[%s926_s3 + $0x60] sm:$0xff]  ;;  %v143_v25 = vld [vmem:[%s926_s3 + $0x70] sm:$0xff]  ;;  %v144_v26 = vld [vmem:[%s926_s3 + $0x78] sm:$0xff] }
  0x19   :  { %570 = vmatprep.subr.bf16.mxu1 %v683_v1  ;;  %v586_v24 = vpack.c.bf16 %v142_v23, %v141_v22  ;;  %v589_v27 = vpack.c.bf16 %v144_v26, %v143_v25  ;;  %v223_v28 = vld [vmem:[%s928_s5] sm:$0xff]  ;;  %v224_v29 = vld [vmem:[%s928_s5 + $0x8] sm:$0xff]  ;;  %v225_v30 = vld [vmem:[%s928_s5 + $0x10] sm:$0xff] }
  0x1a   :  { %v592_v31 = vpack.c.bf16 %v224_v29, %v223_v28  ;;  %v226_v32 = vld [vmem:[%s928_s5 + $0x18] sm:$0xff]  ;;  %v227_v34 = vld [vmem:[%s928_s5 + $0x20] sm:$0xff]  ;;  %v228_v35 = vld [vmem:[%s928_s5 + $0x28] sm:$0xff] }
  0x1b   :  { %v595_v33 = vpack.c.bf16 %v226_v32, %v225_v30  ;;  %v598_v36 = vpack.c.bf16 %v228_v35, %v227_v34  ;;  %v229_v37 = vld [vmem:[%s928_s5 + $0x30] sm:$0xff]  ;;  %v230_v38 = vld [vmem:[%s928_s5 + $0x38] sm:$0xff]  ;;  %v231_v40 = vld [vmem:[%s928_s5 + $0x40] sm:$0xff] }
  0x1c   :  { %572 = vmatpush3.bf16.msra.mxu1 %v571_v9  ;;  %593 = vmatpush3.bf16.msra.mxu0 %v592_v31  ;;  %v601_v39 = vpack.c.bf16 %v230_v38, %v229_v37  ;;  %v232_v41 = vld [vmem:[%s928_s5 + $0x48] sm:$0xff]  ;;  %v233_v43 = vld [vmem:[%s928_s5 + $0x50] sm:$0xff]  ;;  %v234_v44 = vld [vmem:[%s928_s5 + $0x58] sm:$0xff] }
  0x1d   :  { %573 = vmatprep.subr.bf16.mxu1 %v683_v1  ;;  %594 = vmatprep.subr.bf16.mxu0 %v683_v1  ;;  %v604_v42 = vpack.c.bf16 %v232_v41, %v231_v40  ;;  %v607_v45 = vpack.c.bf16 %v234_v44, %v233_v43  ;;  %v235_v46 = vld [vmem:[%s928_s5 + $0x60] sm:$0xff]  ;;  %v236_v47 = vld [vmem:[%s928_s5 + $0x68] sm:$0xff]  ;;  %v237_v54 = vld [vmem:[%s928_s5 + $0x70] sm:$0xff] }
  0x1e   :  { %v610_v48 = vpack.c.bf16 %v236_v47, %v235_v46  ;;  %v422_v49 = vld [vmem:[%s925_s2] ss:$0 sm:$0xff]  ;;  %v238_v55 = vld [vmem:[%s928_s5 + $0x78] sm:$0xff]  ;;  %v318_v58 = vld [vmem:[%s930_s7 + $0x8] sm:$0xff] }
  0x1f   :  { %v613_v56 = vpack.c.bf16 %v238_v55, %v237_v54  ;;  %v317_v57 = vld [vmem:[%s930_s7] sm:$0xff]  ;;  %v319_v59 = vld [vmem:[%s930_s7 + $0x10] sm:$0xff]  ;;  %v320_v61 = vld [vmem:[%s930_s7 + $0x18] sm:$0xff] }
  0x20   :  { %575 = vmatpush3.bf16.msra.mxu1 %v574_v12  ;;  %596 = vmatpush3.bf16.msra.mxu0 %v595_v33  ;;  %v616_v60 = vpack.c.bf16 %v318_v58, %v317_v57  ;;  %v619_v62 = vpack.c.bf16 %v320_v61, %v319_v59  ;;  %v321_v63 = vld [vmem:[%s930_s7 + $0x20] sm:$0xff]  ;;  %v323_v8 = vld [vmem:[%s930_s7 + $0x30] sm:$0xff]  ;;  %v324_v9 = vld [vmem:[%s930_s7 + $0x38] sm:$0xff] }
  0x21   :  { %576 = vmatprep.subr.bf16.mxu1 %v683_v1  ;;  %597 = vmatprep.subr.bf16.mxu0 %v683_v1  ;;  %v424_v3 = vld [vmem:[%s927_s4] ss:$0 sm:$0xff]  ;;  %v625_v10 = vpack.c.bf16 %v324_v9, %v323_v8 }
  0x24   :  { %578 = vmatpush3.bf16.msra.mxu1 %v577_v15  ;;  %599 = vmatpush3.bf16.msra.mxu0 %v598_v36  ;;  %v426_v15 = vld [vmem:[%s931_s8] ss:$0 sm:$0xff] }
  0x25   :  { %579 = vmatprep.subr.bf16.mxu1 %v683_v1  ;;  %600 = vmatprep.subr.bf16.mxu0 %v683_v1 }
  0x28   :  { %581 = vmatpush3.bf16.msra.mxu1 %v580_v18  ;;  %602 = vmatpush3.bf16.msra.mxu0 %v601_v39 }
  0x29   :  { %582 = vmatprep.subr.bf16.mxu1 %v683_v1  ;;  %603 = vmatprep.subr.bf16.mxu0 %v683_v1 }
  0x2c   :  { %584 = vmatpush3.bf16.msra.mxu1 %v583_v21  ;;  %605 = vmatpush3.bf16.msra.mxu0 %v604_v42 }
  0x2d   :  { %585 = vmatprep.subr.bf16.mxu1 %v683_v1  ;;  %606 = vmatprep.subr.bf16.mxu0 %v683_v1 }
  0x30   :  { %587 = vmatpush3.bf16.msra.mxu1 %v586_v24  ;;  %608 = vmatpush3.bf16.msra.mxu0 %v607_v45 }
  0x31   :  { %588 = vmatprep.subr.bf16.mxu1 %v683_v1  ;;  %609 = vmatprep.subr.bf16.mxu0 %v683_v1 }
  0x34   :  { %590 = vmatpush3.bf16.msra.mxu1 %v589_v27  ;;  %611 = vmatpush3.bf16.msra.mxu0 %v610_v48 }
  0x35   :  { %615 = vmatprep.subr.bf16.mxu1 %v683_v1  ;;  %612 = vmatprep.subr.bf16.mxu0 %v683_v1 }
  0x38   :  { %614 = vmatpush3.bf16.msra.mxu0 %v613_v56 }
  0xe9   :  { %v124_v50 = vpop.f32.mrb[0].mxu0 }
  0xea   :  { %v125_v51 = vadd.f32 %v422_v49, %v124_v50  ;;  %v477_v52 = vpop.f32.mrb[1].mxu0 }
  0xec   :  { %v128_v53 = vmax.f32 %v125_v51, 0.0 }
  0xee   :  { %511 = vmatmul.mubr.f32.vlgmr.msra.gmra.mrb[0].mxu1 %v128_v53 }
  0xef   :  { %564 = vmatprep.mubr.msk.f32.mxu1 %vm682_vm0, %v681_v0  ;;  %617 = vmatpush3.bf16.msra.mxu1 %v616_v60  ;;  %v322_v0 = vld [vmem:[%s930_s7 + $0x28] sm:$0xff]  ;;  %s654_s7 = scalar_lea.vmem %s414_s15, 128 }
  0xf0   :  { %618 = vmatprep.subr.bf16.mxu1 %v683_v1  ;;  %v622_v2 = vpack.c.bf16 %v322_v0, %v321_v63  ;;  %p655_p8 = scmp.ne.s32.totalorder %s414_s15, %s654_s7  ;;  %p660_p10 = scmp.lt.s32.totalorder %s654_s7, %s654_s7 }
  0xf2   :  { %p661_p11 = por %p660_p10, %p659_p9 }
  0xf3   :  { %620 = vmatpush3.bf16.msra.mxu1 %v619_v62 }
  0xf4   :  { %621 = vmatprep.subr.bf16.mxu1 %v683_v1  ;;  %p662_p12 = pnand %p661_p11, %p655_p8 }
  0xf7   :  { %623 = vmatpush3.bf16.msra.mxu1 %v622_v2 }
  0xf8   :  { %624 = vmatprep.subr.bf16.mxu1 %v683_v1  ;;  %v425_v1 = vld [vmem:[%s929_s6] ss:$0 sm:$0xff] }
  0xfb   :  { %626 = vmatpush3.bf16.msra.mxu1 %v625_v10 }
 0x1c1   :  { %v218_v4 = vpop.f32.mrb[0].mxu1 }
 0x1c2   :  { %v219_v5 = vadd.f32 %v424_v3, %v218_v4  ;;  %v512_v6 = vpop.f32.mrb[1].mxu1 }
 0x1c4   :  { %v222_v7 = vmax.f32 %v219_v5, 0.0 }
 0x1c6   :  { %546 = vmatmul.mubr.f32.vlgmr.msra.gmra.mrb[2].mxu0 %v222_v7 }
 0x299   :  { %v312_v11 = vpop.f32.mrb[2].mxu0 }
 0x29a   :  { %v313_v12 = vadd.f32 %v425_v1, %v312_v11  ;;  %v547_v13 = vpop.f32.mrb[3].mxu0 }
 0x29c   :  { %v316_v14 = vmax.f32 %v313_v12, 0.0 }
 0x29e   :  { %565 = vmatmul.mubr.msk.f32.vlgmr.msra.gmra.mrb[2].mxu1 %vm332_vm2, %v316_v14 }
 0x371   :  { %v402_v16 = vpop.f32.mrb[2].mxu1 }
 0x372   :  { %v403_v17 = vadd.f32 %v426_v15, %v402_v16  ;;  %v566_v18 = vpop.f32.mrb[3].mxu1 }
 0x374   :  { %406 = vst [vmem:[#allocation5] sm:$0xff] %v403_v17 }
 0x375   :  { %665 = shalt.err (!%p662_p12)
}
 0x376   :  { %s666_s3 = scalar_lea.hbm %s932_s9, 128 }
 0x377   :  { %p667_p13 = scmp.ne.s32.totalorder %s932_s9, %s666_s3  ;;  %p670_p0 = scmp.lt.u32.totalorder %s666_s3, %s932_s9 }
 0x379   :  { %p672_p1 = pnand %p670_p0, %p667_p13 }
 0x37b   :  { %675 = shalt.err (!%p672_p1)
}
 0x37c   :  { %416 = dma.vmem_to_hbm [thread:$0]  %s414_s15, 128, %s932_s9, [#allocation4]  }
 0x37d   :  { %678 = dma.done.wait [#allocation4], 128  }
 0x37e   :  { %679 = vsyncadd [#allocation4], 4294967168 }
 0x37f   :  { %420 = vsyncpa [#allocation3], 1 }
 0x380   :  { %421 = vsyncpa [#allocation4], 1 }

</bundles_post_ra>
